<compile_context>
chip_gen: v7x
topology: tpu7x:2x2x1
jax: 0.10.0
libtpu: 0.0.40
codegen_flags: <defaults>
</compile_context>

<pallas_src>
import functools

import jax
import jax.numpy as jnp
from jax.experimental import pallas as pl
from jax.experimental.pallas import tpu as pltpu

NEG_BIG = -1e30  # finite stand-in for -inf (avoids inf - inf = NaN in rescale)


def _round_up(x, m):
    return (x + m - 1) // m * m


def wap_kernel(pow_ref, x_ref, idxc_ref, idxr_ref, w_ref, wf_ref, bf_ref,
               out_ref, m_ref, *, gate_col):
    # pow_ref : (1,1) f32 SMEM       x_ref   : (TN, Din_pad) bf16
    # idxc_ref: (TN,1) i32           idxr_ref: (1, TN) i32
    # w_ref   : (TN,1) f32           wf_ref  : (Din_pad, Dout_pad) bf16
    # bf_ref  : (1, Dout_pad) f32    out_ref : (S_sub, Dout_pad) f32 accumulator
    # m_ref   : (1, S_lane) f32 scratch -- running per-segment max
    t = pl.program_id(0)
    tn = x_ref.shape[0]
    d_out = out_ref.shape[1]
    s_sub = out_ref.shape[0]
    s_lane = m_ref.shape[1]

    @pl.when(t == 0)
    def _():
        out_ref[...] = jnp.zeros_like(out_ref)
        m_ref[...] = jnp.full_like(m_ref, NEG_BIG)

    p = pow_ref[0, 0]
    idx_c = idxc_ref[...]                                   # [TN, 1]
    idx_r = idxr_ref[...]                                   # [1, TN]
    w = w_ref[...]                                          # [TN, 1]

    # ---- fused message_nn + gate_nn (bf16 MXU operands, f32 accumulate) ----
    msg_ext = jnp.dot(x_ref[...], wf_ref[...],
                      preferred_element_type=jnp.float32) + bf_ref[...]
    # extract the gate column (lane `gate_col`) with a masked lane reduce
    lane_d = jax.lax.broadcasted_iota(jnp.int32, (tn, d_out), 1)
    gate_lin = jnp.sum(jnp.where(lane_d == gate_col, msg_ext, 0.0),
                       axis=1, keepdims=True)               # [TN, 1]

    # ---- one-hot segment masks (both orientations; no in-kernel transposes) ----
    lane_s = jax.lax.broadcasted_iota(jnp.int32, (tn, s_lane), 1)
    onehot_ns = lane_s == idx_c                             # [TN, S_lane]
    sub_s = jax.lax.broadcasted_iota(jnp.int32, (s_sub, tn), 0)
    onehot_sn = (sub_s == idx_r).astype(jnp.bfloat16)       # [S_sub, TN]

    # ---- online scatter_max across node tiles ----
    tile_max = jnp.max(jnp.where(onehot_ns, gate_lin, NEG_BIG),
                       axis=0, keepdims=True)               # [1, S_lane]
    m_old = m_ref[...]
    m_new = jnp.maximum(m_old, tile_max)
    m_ref[...] = m_new

    # rescale resident accumulator rows by exp(m_old - m_new); move the factor
    # from row-form to column-form with a tiny diag-mask lane reduce
    resc_row = jnp.exp(m_old - m_new)                       # [1, S_lane]
    eye = (jax.lax.broadcasted_iota(jnp.int32, (s_sub, s_lane), 0)
           == jax.lax.broadcasted_iota(jnp.int32, (s_sub, s_lane), 1))
    resc_col = jnp.sum(jnp.where(eye, resc_row, 0.0),
                       axis=1, keepdims=True)               # [S_sub, 1]
    out_ref[...] = out_ref[...] * resc_col

    # ---- weighted softmax numerator (f32 on VPU/EUP) ----
    node_max = jnp.sum(jnp.where(onehot_ns, m_new, 0.0),
                       axis=1, keepdims=True)               # [TN, 1]
    log_w = jnp.log(w)
    wp = jnp.exp(p * log_w)                                 # w ** p (one EUP exp)
    # TODO(synk): w == 0 together with p == 0 would give NaN (log(0)*0); the
    # module's weights are strictly positive so this path is never exercised.
    scale = jnp.where(p > 0, wp, 1.0 / (1.0 / wp + 1e-10))
    gate_exp = scale * jnp.exp(gate_lin - node_max)         # [TN, 1]

    # ---- scatter_add of [gate*msg | gate] via pre-transposed one-hot matmul ----
    weighted = (gate_exp * msg_ext).astype(jnp.bfloat16)    # [TN, Dout_pad]
    out_ref[...] += jnp.dot(onehot_sn, weighted,
                            preferred_element_type=jnp.float32)


def weighted_attention_pooling(x, index, weights, params, num_segments, *,
                               tile_n=128):
    """Pallas forward pass of WeightedAttentionPooling.

    x: [N, D], index: [N] int, weights: [N] or [N, 1]; returns [S, D] f32.
    """
    N, D = x.shape
    S = num_segments

    d_in_pad = _round_up(D, 128)
    gate_col = D                      # column of the fused matmul holding gate
    ones_col = D + 1                  # column that becomes the softmax denom
    d_out_pad = _round_up(D + 2, 128)
    s_sub = _round_up(S, 8)           # output sublane padding
    s_lane = _round_up(S, 128)        # lane padding for the running-max row
    n_pad = _round_up(N, tile_n)
    n_tiles = n_pad // tile_n

    # ---- lane-dense padded operands ----
    xp = jnp.zeros((n_pad, d_in_pad), jnp.bfloat16)
    xp = xp.at[:N, :D].set(x.astype(jnp.bfloat16))

    idx = jnp.full((n_pad,), -1, jnp.int32).at[:N].set(index.astype(jnp.int32))
    idx_col = idx.reshape(n_pad, 1)
    idx_row = idx.reshape(1, n_pad)

    w2 = jnp.ones((n_pad, 1), jnp.float32)
    w2 = w2.at[:N, :].set(weights.reshape(N, 1).astype(jnp.float32))

    # fused weight: [msg_w | gate_w | 0 (ones col) | 0 ...]
    wf = jnp.zeros((d_in_pad, d_out_pad), jnp.float32)
    wf = wf.at[:D, :D].set(params["msg_w"].astype(jnp.float32))
    wf = wf.at[:D, gate_col].set(params["gate_w"].reshape(D).astype(jnp.float32))
    wf = wf.astype(jnp.bfloat16)

    # fused bias: [msg_b | gate_b | 1 | 0 ...]
    bf = jnp.zeros((1, d_out_pad), jnp.float32)
    bf = bf.at[0, :D].set(params["msg_b"].astype(jnp.float32))
    bf = bf.at[0, gate_col].set(params["gate_b"].reshape(()).astype(jnp.float32))
    bf = bf.at[0, ones_col].set(1.0)

    pw = params["pow"].reshape(1, 1).astype(jnp.float32)

    grid_spec = pltpu.PrefetchScalarGridSpec(
        num_scalar_prefetch=0,
        grid=(n_tiles,),
        in_specs=[
            pl.BlockSpec(memory_space=pltpu.MemorySpace.SMEM),       # pow
            pl.BlockSpec((tile_n, d_in_pad), lambda t: (t, 0)),      # x (bf16)
            pl.BlockSpec((tile_n, 1), lambda t: (t, 0)),             # index col
            pl.BlockSpec((1, tile_n), lambda t: (0, t)),             # index row
            pl.BlockSpec((tile_n, 1), lambda t: (t, 0)),             # weights
            pl.BlockSpec((d_in_pad, d_out_pad), lambda t: (0, 0)),   # W fused
            pl.BlockSpec((1, d_out_pad), lambda t: (0, 0)),          # b fused
        ],
        out_specs=pl.BlockSpec((s_sub, d_out_pad), lambda t: (0, 0)),
        scratch_shapes=[pltpu.VMEM((1, s_lane), jnp.float32)],
    )

    out_ext = pl.pallas_call(
        functools.partial(wap_kernel, gate_col=gate_col),
        out_shape=jax.ShapeDtypeStruct((s_sub, d_out_pad), jnp.float32),
        grid_spec=grid_spec,
        compiler_params=pltpu.CompilerParams(
            # node-tile axis is a reduction into the resident output block.
            # TODO(synk): with sorted indices + scalar-prefetched per-tile
            # segment offsets the tiles become segment-disjoint and this axis
            # could be marked "parallel" to use both v7x TensorCores.
            dimension_semantics=("arbitrary",),
            vmem_limit_bytes=32 * 1024 * 1024,
        ),
    )(pw, xp, idx_col, idx_row, w2, wf, bf)

    num = out_ext[:S, :D]
    den = out_ext[:S, ones_col:ones_col + 1]
    return num / (den + 1e-10)


def reference(x, index, weights, params, num_segments):
    """Pure-JAX (f32) reference of the PyTorch forward pass."""
    S = num_segments
    w = weights.reshape(-1, 1)
    gate = x @ params["gate_w"] + params["gate_b"]                        # [N, 1]
    gate = gate - jax.ops.segment_max(gate, index, num_segments=S)[index]
    p = params["pow"][0]
    gate = jnp.where(p > 0,
                     w ** p * jnp.exp(gate),
                     1.0 / (w ** jnp.abs(p) + 1e-10) * jnp.exp(gate))
    gate = gate / (jax.ops.segment_sum(gate, index, num_segments=S)[index] + 1e-10)
    msg = x @ params["msg_w"] + params["msg_b"]
    return jax.ops.segment_sum(gate * msg, index, num_segments=S)


if __name__ == "__main__":
    key = jax.random.PRNGKey(0)
    k_x, k_i, k_w, k_p, k_gw, k_gb, k_mw, k_mb = jax.random.split(key, 8)

    N, D, S = 300, 32, 5          # nodes, feature dim, segments (graphs)

    x = jax.random.normal(k_x, (N, D), dtype=jnp.float32)
    index = jax.random.randint(k_i, (N,), 0, S, dtype=jnp.int32)
    weights = jax.random.uniform(k_w, (N, 1), minval=0.1, maxval=1.0,
                                 dtype=jnp.float32)

    params = {
        "pow":    jax.random.normal(k_p, (1,), dtype=jnp.float32),   # torch.randn(1)
        "gate_w": jax.random.normal(k_gw, (D, 1), dtype=jnp.float32) * 0.1,
        "gate_b": jax.random.normal(k_gb, (1,), dtype=jnp.float32) * 0.1,
        "msg_w":  jax.random.normal(k_mw, (D, D), dtype=jnp.float32) * 0.1,
        "msg_b":  jax.random.normal(k_mb, (D,), dtype=jnp.float32) * 0.1,
    }

    out = weighted_attention_pooling(x, index, weights, params, S)
    out = jax.block_until_ready(out)

    ref = reference(x, index, weights, params, S)
    assert out.shape == (S, D)
    # MXU operands are bf16 per the perf review; tolerance accounts for that.
    assert jnp.allclose(out, ref, rtol=3e-2, atol=3e-2), (
        float(jnp.max(jnp.abs(out - ref))))

    print("KERNEL_OK")
</pallas_src>

<mosaic_0001>
module attributes {stable_mosaic.version = 11 : i64} {
  func.func @wap_kernel(%arg0: i32, %arg1: memref<1x1xf32, #tpu.memory_space<smem>>, %arg2: memref<128x128xbf16, #tpu.memory_space<vmem>>, %arg3: memref<128x1xi32, #tpu.memory_space<vmem>>, %arg4: memref<1x128xi32, #tpu.memory_space<vmem>>, %arg5: memref<128x1xf32, #tpu.memory_space<vmem>>, %arg6: memref<128x128xbf16, #tpu.memory_space<vmem>>, %arg7: memref<1x128xf32, #tpu.memory_space<vmem>>, %arg8: memref<8x128xf32, #tpu.memory_space<vmem>>, %arg9: memref<1x128xf32, #tpu.memory_space<vmem>>) attributes {dimension_semantics = [#tpu.dimension_semantics<arbitrary>], iteration_bounds = array<i64: 3>, scalar_prefetch = 0 : i64, scratch_operands = 1 : i64, tpu.core_type = #tpu.core_type<tc>, window_params = [{transform_indices = @transform_0, window_bounds = array<i64: 1, 1>}, {transform_indices = @transform_1, window_bounds = array<i64: 128, 128>}, {transform_indices = @transform_2, window_bounds = array<i64: 128, 1>}, {transform_indices = @transform_3, window_bounds = array<i64: 1, 128>}, {transform_indices = @transform_4, window_bounds = array<i64: 128, 1>}, {pipeline_mode = #tpu.pipeline_mode<synchronous>, transform_indices = @transform_5, window_bounds = array<i64: 128, 128>}, {pipeline_mode = #tpu.pipeline_mode<synchronous>, transform_indices = @transform_6, window_bounds = array<i64: 1, 128>}, {pipeline_mode = #tpu.pipeline_mode<synchronous>, transform_indices = @transform_7, window_bounds = array<i64: 8, 128>}]} {
    %c0_i32 = arith.constant 0 : i32
    %0 = arith.cmpi eq, %arg0, %c0_i32 : i32
    %1 = arith.extui %0 : i1 to i32
    %c0_i32_0 = arith.constant 0 : i32
    %2 = arith.cmpi ne, %1, %c0_i32_0 : i32
    scf.if %2 {
      %cst_39 = arith.constant 0.000000e+00 : f32
      %81 = vector.broadcast %cst_39 : f32 to vector<8x128xf32>
      %c0_40 = arith.constant 0 : index
      %c0_41 = arith.constant 0 : index
      %82 = vector.load %arg8[%c0_40, %c0_41] : memref<8x128xf32, #tpu.memory_space<vmem>>, vector<8x128xf32>
      tpu.vector_store %arg8[%c0_40, %c0_41], %81 {strides = array<i32>} : memref<8x128xf32, #tpu.memory_space<vmem>>, vector<8x128xf32>,
      %cst_42 = arith.constant -1.000000e+30 : f32
      %83 = vector.broadcast %cst_42 : f32 to vector<1x128xf32>
      %c0_43 = arith.constant 0 : index
      %c0_44 = arith.constant 0 : index
      %84 = vector.load %arg9[%c0_43, %c0_44] : memref<1x128xf32, #tpu.memory_space<vmem>>, vector<1x128xf32>
      tpu.vector_store %arg9[%c0_43, %c0_44], %83 {strides = array<i32>} : memref<1x128xf32, #tpu.memory_space<vmem>>, vector<1x128xf32>,
    } else {
    }
    %c0 = arith.constant 0 : index
    %c0_1 = arith.constant 0 : index
    %3 = memref.load %arg1[%c0, %c0_1] : memref<1x1xf32, #tpu.memory_space<smem>>
    %c0_2 = arith.constant 0 : index
    %c0_3 = arith.constant 0 : index
    %4 = vector.load %arg3[%c0_2, %c0_3] : memref<128x1xi32, #tpu.memory_space<vmem>>, vector<128x1xi32>
    %c0_4 = arith.constant 0 : index
    %c0_5 = arith.constant 0 : index
    %5 = vector.load %arg4[%c0_4, %c0_5] : memref<1x128xi32, #tpu.memory_space<vmem>>, vector<1x128xi32>
    %c0_6 = arith.constant 0 : index
    %c0_7 = arith.constant 0 : index
    %6 = vector.load %arg5[%c0_6, %c0_7] : memref<128x1xf32, #tpu.memory_space<vmem>>, vector<128x1xf32>
    %c0_8 = arith.constant 0 : index
    %c0_9 = arith.constant 0 : index
    %7 = vector.load %arg2[%c0_8, %c0_9] : memref<128x128xbf16, #tpu.memory_space<vmem>>, vector<128x128xbf16>
    %c0_10 = arith.constant 0 : index
    %c0_11 = arith.constant 0 : index
    %8 = vector.load %arg6[%c0_10, %c0_11] : memref<128x128xbf16, #tpu.memory_space<vmem>>, vector<128x128xbf16>
    %cst = arith.constant dense<0.000000e+00> : vector<128x128xf32>
    %9 = tpu.matmul %7, %8, %cst {dimension_numbers = #tpu.dot_dimension_numbers<[1], [0], [0], [1], [0, 0, 1, 1], [], []>} : vector<128x128xbf16>, vector<128x128xbf16>, vector<128x128xf32> -> vector<128x128xf32>
    %c0_12 = arith.constant 0 : index
    %c0_13 = arith.constant 0 : index
    %10 = vector.load %arg7[%c0_12, %c0_13] : memref<1x128xf32, #tpu.memory_space<vmem>>, vector<1x128xf32>
    %11 = vector.broadcast %10 : vector<1x128xf32> to vector<128x128xf32>
    %12 = arith.addf %9, %11 : vector<128x128xf32>
    %13 = tpu.iota {dimensions = array<i32: 1>} : vector<128x128xi32>
    %c32_i32 = arith.constant 32 : i32
    %14 = vector.broadcast %c32_i32 : i32 to vector<128x128xi32>
    %15 = arith.cmpi eq, %13, %14 : vector<128x128xi32>
    %cst_14 = arith.constant 0.000000e+00 : f32
    %16 = vector.broadcast %cst_14 : f32 to vector<128x128xf32>
    %17 = arith.select %15, %12, %16 : vector<128x128xi1>, vector<128x128xf32>
    %cst_15 = arith.constant dense<0.000000e+00> : vector<128xf32>
    %18 = vector.multi_reduction <add>, %17, %cst_15 [1] : vector<128x128xf32> to vector<128xf32>
    %19 = vector.shape_cast %18 : vector<128xf32> to vector<128x1xf32>
    %20 = tpu.iota {dimensions = array<i32: 1>} : vector<128x128xi32>
    %21 = vector.broadcast %4 : vector<128x1xi32> to vector<128x128xi32>
    %22 = arith.cmpi eq, %20, %21 : vector<128x128xi32>
    %23 = tpu.iota {dimensions = array<i32: 0>} : vector<8x128xi32>
    %24 = vector.broadcast %5 : vector<1x128xi32> to vector<8x128xi32>
    %25 = arith.cmpi eq, %23, %24 : vector<8x128xi32>
    %26 = arith.extui %25 : vector<8x128xi1> to vector<8x128xi32>
    %27 = arith.sitofp %26 : vector<8x128xi32> to vector<8x128xf32>
    %28 = arith.truncf %27 : vector<8x128xf32> to vector<8x128xbf16>
    %cst_16 = arith.constant -1.000000e+30 : f32
    %29 = vector.shape_cast %19 : vector<128x1xf32> to vector<128x1xf32>
    %30 = vector.broadcast %29 : vector<128x1xf32> to vector<128x128xf32>
    %31 = vector.broadcast %cst_16 : f32 to vector<128x128xf32>
    %32 = arith.select %22, %30, %31 : vector<128x128xi1>, vector<128x128xf32>
    %cst_17 = arith.constant dense<0xFF800000> : vector<128xf32>
    %33 = vector.multi_reduction <maximumf>, %32, %cst_17 [0] : vector<128x128xf32> to vector<128xf32>
    %34 = vector.shape_cast %33 : vector<128xf32> to vector<1x128xf32>
    %c0_18 = arith.constant 0 : index
    %c0_19 = arith.constant 0 : index
    %35 = vector.load %arg9[%c0_18, %c0_19] : memref<1x128xf32, #tpu.memory_space<vmem>>, vector<1x128xf32>
    %36 = arith.maximumf %35, %34 : vector<1x128xf32>
    %c0_20 = arith.constant 0 : index
    %c0_21 = arith.constant 0 : index
    %37 = vector.load %arg9[%c0_20, %c0_21] : memref<1x128xf32, #tpu.memory_space<vmem>>, vector<1x128xf32>
    tpu.vector_store %arg9[%c0_20, %c0_21], %36 {strides = array<i32>} : memref<1x128xf32, #tpu.memory_space<vmem>>, vector<1x128xf32>,
    %38 = arith.subf %35, %36 : vector<1x128xf32>
    %39 = math.exp %38 : vector<1x128xf32>
    %40 = tpu.iota {dimensions = array<i32: 0>} : vector<8x128xi32>
    %41 = tpu.iota {dimensions = array<i32: 1>} : vector<8x128xi32>
    %42 = arith.cmpi eq, %40, %41 : vector<8x128xi32>
    %cst_22 = arith.constant 0.000000e+00 : f32
    %43 = vector.shape_cast %39 : vector<1x128xf32> to vector<1x128xf32>
    %44 = vector.broadcast %43 : vector<1x128xf32> to vector<8x128xf32>
    %45 = vector.broadcast %cst_22 : f32 to vector<8x128xf32>
    %46 = arith.select %42, %44, %45 : vector<8x128xi1>, vector<8x128xf32>
    %cst_23 = arith.constant dense<0.000000e+00> : vector<8xf32>
    %47 = vector.multi_reduction <add>, %46, %cst_23 [1] : vector<8x128xf32> to vector<8xf32>
    %48 = vector.shape_cast %47 : vector<8xf32> to vector<8x1xf32>
    %c0_24 = arith.constant 0 : index
    %c0_25 = arith.constant 0 : index
    %49 = vector.load %arg8[%c0_24, %c0_25] : memref<8x128xf32, #tpu.memory_space<vmem>>, vector<8x128xf32>
    %50 = vector.broadcast %48 : vector<8x1xf32> to vector<8x128xf32>
    %51 = arith.mulf %49, %50 : vector<8x128xf32>
    %c0_26 = arith.constant 0 : index
    %c0_27 = arith.constant 0 : index
    %52 = vector.load %arg8[%c0_26, %c0_27] : memref<8x128xf32, #tpu.memory_space<vmem>>, vector<8x128xf32>
    tpu.vector_store %arg8[%c0_26, %c0_27], %51 {strides = array<i32>} : memref<8x128xf32, #tpu.memory_space<vmem>>, vector<8x128xf32>,
    %cst_28 = arith.constant 0.000000e+00 : f32
    %53 = vector.shape_cast %36 : vector<1x128xf32> to vector<1x128xf32>
    %54 = vector.broadcast %53 : vector<1x128xf32> to vector<128x128xf32>
    %55 = vector.broadcast %cst_28 : f32 to vector<128x128xf32>
    %56 = arith.select %22, %54, %55 : vector<128x128xi1>, vector<128x128xf32>
    %cst_29 = arith.constant dense<0.000000e+00> : vector<128xf32>
    %57 = vector.multi_reduction <add>, %56, %cst_29 [1] : vector<128x128xf32> to vector<128xf32>
    %58 = vector.shape_cast %57 : vector<128xf32> to vector<128x1xf32>
    %59 = math.log %6 : vector<128x1xf32>
    %60 = vector.broadcast %3 : f32 to vector<128x1xf32>
    %61 = arith.mulf %60, %59 : vector<128x1xf32>
    %62 = math.exp %61 : vector<128x1xf32>
    %cst_30 = arith.constant 0.000000e+00 : f32
    %63 = arith.cmpf ogt, %3, %cst_30 : f32
    %cst_31 = arith.constant 1.000000e+00 : f32
    %64 = vector.broadcast %cst_31 : f32 to vector<128x1xf32>
    %65 = arith.divf %64, %62 : vector<128x1xf32>
    %cst_32 = arith.constant 1.000000e-10 : f32
    %66 = vector.broadcast %cst_32 : f32 to vector<128x1xf32>
    %67 = arith.addf %65, %66 : vector<128x1xf32>
    %cst_33 = arith.constant 1.000000e+00 : f32
    %68 = vector.broadcast %cst_33 : f32 to vector<128x1xf32>
    %69 = arith.divf %68, %67 : vector<128x1xf32>
    %70 = arith.select %63, %62, %69 : vector<128x1xf32>
    %71 = arith.subf %19, %58 : vector<128x1xf32>
    %72 = math.exp %71 : vector<128x1xf32>
    %73 = arith.mulf %70, %72 : vector<128x1xf32>
    %74 = vector.broadcast %73 : vector<128x1xf32> to vector<128x128xf32>
    %75 = arith.mulf %74, %12 : vector<128x128xf32>
    %76 = arith.truncf %75 : vector<128x128xf32> to vector<128x128xbf16>
    %c0_34 = arith.constant 0 : index
    %c0_35 = arith.constant 0 : index
    %77 = vector.load %arg8[%c0_34, %c0_35] : memref<8x128xf32, #tpu.memory_space<vmem>>, vector<8x128xf32>
    %cst_36 = arith.constant dense<0.000000e+00> : vector<8x128xf32>
    %78 = tpu.matmul %28, %76, %cst_36 {dimension_numbers = #tpu.dot_dimension_numbers<[1], [0], [0], [1], [0, 0, 1, 1], [], []>} : vector<8x128xbf16>, vector<128x128xbf16>, vector<8x128xf32> -> vector<8x128xf32>
    %79 = arith.addf %77, %78 : vector<8x128xf32>
    %c0_37 = arith.constant 0 : index
    %c0_38 = arith.constant 0 : index
    %80 = vector.load %arg8[%c0_37, %c0_38] : memref<8x128xf32, #tpu.memory_space<vmem>>, vector<8x128xf32>
    tpu.vector_store %arg8[%c0_37, %c0_38], %79 {strides = array<i32>} : memref<8x128xf32, #tpu.memory_space<vmem>>, vector<8x128xf32>,
    return
  }
  func.func @transform_0(%arg0: i32) -> (i32, i32) {
    %c0_i32 = arith.constant 0 : i32
    %c0_i32_0 = arith.constant 0 : i32
    %c0_i32_1 = arith.constant 0 : i32
    return %c0_i32, %c0_i32_0 : i32, i32
  }
  func.func @transform_1(%arg0: i32) -> (i32, i32) {
    %c0_i32 = arith.constant 0 : i32
    %c0_i32_0 = arith.constant 0 : i32
    return %arg0, %c0_i32 : i32, i32
  }
  func.func @transform_2(%arg0: i32) -> (i32, i32) {
    %c0_i32 = arith.constant 0 : i32
    %c0_i32_0 = arith.constant 0 : i32
    return %arg0, %c0_i32 : i32, i32
  }
  func.func @transform_3(%arg0: i32) -> (i32, i32) {
    %c0_i32 = arith.constant 0 : i32
    %c0_i32_0 = arith.constant 0 : i32
    return %c0_i32, %arg0 : i32, i32
  }
  func.func @transform_4(%arg0: i32) -> (i32, i32) {
    %c0_i32 = arith.constant 0 : i32
    %c0_i32_0 = arith.constant 0 : i32
    return %arg0, %c0_i32 : i32, i32
  }
  func.func @transform_5(%arg0: i32) -> (i32, i32) {
    %c0_i32 = arith.constant 0 : i32
    %c0_i32_0 = arith.constant 0 : i32
    %c0_i32_1 = arith.constant 0 : i32
    return %c0_i32, %c0_i32_0 : i32, i32
  }
  func.func @transform_6(%arg0: i32) -> (i32, i32) {
    %c0_i32 = arith.constant 0 : i32
    %c0_i32_0 = arith.constant 0 : i32
    %c0_i32_1 = arith.constant 0 : i32
    return %c0_i32, %c0_i32_0 : i32, i32
  }
  func.func @transform_7(%arg0: i32) -> (i32, i32) {
    %c0_i32 = arith.constant 0 : i32
    %c0_i32_0 = arith.constant 0 : i32
    %c0_i32_1 = arith.constant 0 : i32
    return %c0_i32, %c0_i32_0 : i32, i32
  }
}

</mosaic_0001>

<bundles_post_ra>
// kernel: tpu_custom_call.1
= control target key start
LH: loop header
LB: loop body
LE: loop exit
PB: predicated region body
PF: predicated region fallthrough
CT: control target
= control target key end

     0   :  { %s2323_s0 = inlined_call_operand.<no memory space> [shape: f32[1,1], index: 0, kind: input, shape index: {}]   ;;  %s2324_s1 = inlined_call_operand.vmem [shape: bf16[384,128], index: 1, kind: input, shape index: {}]   ;;  %s2325_s2 = inlined_call_operand.vmem [shape: s32[384,1], index: 2, kind: input, shape index: {}]   ;;  %s2326_s3 = inlined_call_operand.vmem [shape: s32[1,384], index: 3, kind: input, shape index: {}]   ;;  %s2327_s4 = inlined_call_operand.vmem [shape: f32[384,1], index: 4, kind: input, shape index: {}]   ;;  %s2328_s5 = inlined_call_operand.vmem [shape: bf16[128,128], index: 5, kind: input, shape index: {}]   ;;  %s2329_s6 = inlined_call_operand.vmem [shape: f32[1,128], index: 6, kind: input, shape index: {}]   ;;  %s2330_s7 = inlined_call_operand.hbm [shape: f32[8,128], index: 7, kind: output, shape index: {}]  }
   0x1   :  { %12 = sst [smem:[#allocation3]] %s2323_s0 }
   0x2   :  { %13 = vsyncpa [#allocation5], 0  ;;  %s1707_s26 = smov 0  }
   0x3 LB: > { %s1713_s27 = sadd.s32 4294967295, %s1655_s26   ;;  %p1308_p0 = scmp.ge.s32.totalorder %s1655_s26, 1  ;;  %s1655_s26 = sphi %s1707_s26, %s19_s26  }
   0x4   : > { %p265_p1 = scmp.lt.s32.totalorder %s1655_s26, 4 }
   0x6   : > { %p266_p2 = pnand %p1308_p0, %p265_p1 }
   0x8   : > { %269 = sbr.rel (%p266_p2) target bundleno = 1030 (0x406), region = 48 }
   0xf   : > { %s1309_s0 = sshll.u32 %s1713_s27, 4  ;;  %p317_p3 = scmp.lt.s32.totalorder %s1713_s27, 2 }
  0x10   : > { %p306_p4 = scmp.lt.s32.totalorder %s1309_s0, 47  ;;  %p1315_p5 = scmp.ne.s32.totalorder %s1713_s27, 0 }
  0x11   : > { %s1720_s28 = scalar_select %p317_p3, %s1713_s27, 2 }
  0x12   : > { %s2360_s0 = smov (!%p306_p4, %s1309_s0), 47  ;;  %330 = sbr.rel (%p1315_p5) target bundleno = 25 (0x19), region = 52 }
  0x13   : > { %s319_s8 = scalar_lea.vmem %s2326_s3, %s1720_s28  ;;  %s1310_s9 = sshll.u32 %s2360_s0, 2  ;;  %v1657_v0 = vmov (!%p1315_p5), 0.0   ;;  %v1658_v1 = vmov (!%p1315_p5), -1e+30  }
  0x14   : > { %s1312_s10 = sshll.u32 %s2360_s0, 3  ;;  %s1729_s13 = scalar_lea.vmem %s2324_s1, %s1310_s9  ;;  %331 = vst [vmem:[#allocation4] sm:$0xff] (!%p1315_p5), %v1657_v0  ;;  %332 = vst [vmem:[#allocation2] sm:$0x1] (!%p1315_p5), %v1658_v1 }
  0x15   : > { %s1734_s16 = scalar_lea.vmem %s2325_s2, %s1312_s10  ;;  %s1739_s19 = scalar_lea.vmem %s2327_s4, %s1312_s10 }
  0x19 PF: > { %v1441_v2 = vld [vmem:[%s2328_s5] sm:$0xff]   ;;  %v1442_v3 = vld [vmem:[%s2328_s5 + $0x8] sm:$0xff]   ;;  %v1659_v4 = vmov 0   ;;  %v1443_v5 = vld [vmem:[%s2328_s5 + $0x10] sm:$0xff]   ;;  %v2331_v33 = vlaneseq  ;;  %s1663_s28 = smov [#allocation4]   ;;  %p1422_p7 = scmp.eq.s32.totalorder %s1713_s27, 2 }
  0x1a   : > { %1440 = vset.pattern.permute.xlu1 %v1659_v4  ;;  %1439 = vset.pattern.permute.xlu0 %v1659_v4  ;;  %v1444_v6 = vld [vmem:[%s2328_s5 + $0x18] sm:$0xff]   ;;  %v1449_v7 = vld [vmem:[%s1729_s13] sm:$0xff]   ;;  %v1446_v9 = vld [vmem:[%s2328_s5 + $0x28] sm:$0xff]  }
  0x1b   : > { %1366 = vmatprep.subr.bf16.mxu0 %v1441_v2  ;;  %1382 = vmatprep.mubr.bf16.mxu0 %v1449_v7  ;;  %v1445_v8 = vld [vmem:[%s2328_s5 + $0x20] sm:$0xff]   ;;  %v335_v10 = vld [vmem:[%s1734_s16 + $0x8] sm:$0xff]  ;;  %v336_v11 = vld [vmem:[%s1734_s16 + $0x10] sm:$0xff]  ;;  %v1789_v34 = vand.u32 127, %v2331_v33 }
  0x1c   : > { %1367 = vmatpush3.bf16.msra.mxu0 %v1441_v2  ;;  %654 = vperm.xlu1 %1440, %v335_v10   ;;  %v334_v12 = vld [vmem:[%s1734_s16] sm:$0xff]  ;;  %v1447_v13 = vld [vmem:[%s2328_s5 + $0x30] sm:$0xff]   ;;  %v343_v14 = vld [vmem:[%s1734_s16 + $0x48] sm:$0xff] }
  0x1d   : > { %1368 = vmatprep.subr.bf16.mxu0 %v1442_v3  ;;  %651 = vperm.xlu0 %1439, %v334_v12   ;;  %v337_v15 = vld [vmem:[%s1734_s16 + $0x18] sm:$0xff]  ;;  %v338_v18 = vld [vmem:[%s1734_s16 + $0x20] sm:$0xff]  ;;  %v347_v19 = vld [vmem:[%s1734_s16 + $0x68] sm:$0xff]  ;;  %vm601_vm0 = vcmp.eq.s32.totalorder %v1789_v34, 32 }
  0x1e   : > { %v1448_v16 = vld [vmem:[%s2328_s5 + $0x38] sm:$0xff]   ;;  %v1450_v20 = vld [vmem:[%s1729_s13 + $0x8] sm:$0xff]   ;;  %v1451_v22 = vld [vmem:[%s1729_s13 + $0x10] sm:$0xff]  }
  0x1f   : > { %v345_v17 = vld [vmem:[%s1734_s16 + $0x58] sm:$0xff]  ;;  %v339_v21 = vld [vmem:[%s1734_s16 + $0x28] sm:$0xff]  ;;  %v340_v23 = vld [vmem:[%s1734_s16 + $0x30] sm:$0xff] }
  0x20   : > { %1369 = vmatpush3.bf16.msra.mxu0 %v1442_v3  ;;  %657 = vperm.xlu1 %1440, %v336_v11   ;;  %v1452_v24 = vld [vmem:[%s1729_s13 + $0x18] sm:$0xff]   ;;  %v1453_v26 = vld [vmem:[%s1729_s13 + $0x20] sm:$0xff]   ;;  %v1454_v28 = vld [vmem:[%s1729_s13 + $0x28] sm:$0xff]  }
  0x21   : > { %1370 = vmatprep.subr.bf16.mxu0 %v1443_v5  ;;  %678 = vperm.xlu0 %1439, %v343_v14   ;;  %v341_v25 = vld [vmem:[%s1734_s16 + $0x38] sm:$0xff]  ;;  %v342_v27 = vld [vmem:[%s1734_s16 + $0x40] sm:$0xff]  ;;  %v344_v29 = vld [vmem:[%s1734_s16 + $0x50] sm:$0xff] }
  0x22   : > { %v1455_v30 = vld [vmem:[%s1729_s13 + $0x30] sm:$0xff]   ;;  %v346_v31 = vld [vmem:[%s1734_s16 + $0x60] sm:$0xff]  ;;  %v1456_v32 = vld [vmem:[%s1729_s13 + $0x38] sm:$0xff]   ;;  %s2088_s13 = sld [smem:[#allocation3]] }
  0x23   : > { %v1316_v35 = vld [vmem:[%s2329_s6] ss:$0 sm:$0xff] }
  0x24   : > { %1371 = vmatpush3.bf16.msra.mxu0 %v1443_v5  ;;  %660 = vperm.xlu1 %1440, %v337_v15  }
  0x25   : > { %1372 = vmatprep.subr.bf16.mxu0 %v1444_v6  ;;  %684 = vperm.xlu0 %1439, %v345_v17  }
  0x28   : > { %1373 = vmatpush3.bf16.msra.mxu0 %v1444_v6  ;;  %663 = vperm.xlu1 %1440, %v338_v18   ;;  %p915_p6 = scmp.gt.f32.partialorder %s2088_s13, 0.0 }
  0x29   : > { %1374 = vmatprep.subr.bf16.mxu0 %v1445_v8  ;;  %690 = vperm.xlu0 %1439, %v347_v19  }
  0x2c   : > { %1375 = vmatpush3.bf16.msra.mxu0 %v1445_v8  ;;  %666 = vperm.xlu1 %1440, %v339_v21   ;;  %v349_v21 = vld [vmem:[%s1734_s16 + $0x78] sm:$0xff] }
  0x2d   : > { %1376 = vmatprep.subr.bf16.mxu0 %v1446_v9 }
  0x30   : > { %1377 = vmatpush3.bf16.msra.mxu0 %v1446_v9  ;;  %669 = vperm.xlu1 %1440, %v340_v23  }
  0x31   : > { %1378 = vmatprep.subr.bf16.mxu0 %v1447_v13 }
  0x34   : > { %1379 = vmatpush3.bf16.msra.mxu0 %v1447_v13  ;;  %672 = vperm.xlu1 %1440, %v341_v25  }
  0x35   : > { %1380 = vmatprep.subr.bf16.mxu0 %v1448_v16 }
  0x38   : > { %1381 = vmatpush3.bf16.msra.mxu0 %v1448_v16  ;;  %675 = vperm.xlu1 %1440, %v342_v27  }
  0x3b   : > { %1383 = vmatmul.mubr.bf16.vlgmr.msra.gmra.mrb[0].mxu0 %v1450_v20  ;;  %v348_v20 = vld [vmem:[%s1734_s16 + $0x70] sm:$0xff]  ;;  %s996_s16 = scalar_select %p915_p6, 1, 0 }
  0x3c   : > { %1386 = vmatprep.mubr.bf16.mxu0 %v1451_v22  ;;  %681 = vperm.xlu1 %1440, %v344_v29  }
  0x40   : > { %687 = vperm.xlu1 %1440, %v346_v31  }
  0x43   : > { %1387 = vmatmul.mubr.bf16.gmra.mrb[4].mxu0 %v1452_v24 }
  0x44   : > { %1390 = vmatprep.mubr.bf16.mxu0 %v1453_v26 }
  0x4b   : > { %1391 = vmatmul.mubr.bf16.gmra.mrb[8].mxu0 %v1454_v28 }
  0x4c   : > { %1394 = vmatprep.mubr.bf16.mxu0 %v1455_v30 }
  0x53   : > { %1395 = vmatmul.mubr.bf16.gmra.mrb[12].mxu0 %v1456_v32 }
  0x9b   : > { %v1877_v22 = vpop.permute.xlu1 %654 }
  0x9c   : > { %v1891_v29 = vpop.permute.xlu0 %651  ;;  %vm699_vm1 = vcmp.eq.s32.totalorder %v1789_v34, %v1877_v22 }
  0x9d   : > { %vm698_vm8 = vcmp.eq.s32.totalorder %v1789_v34, %v1891_v29 }
  0x9f   : > { %v1879_v23 = vpop.permute.xlu1 %657 }
  0xa0   : > { %v1895_v31 = vpop.permute.xlu0 %678  ;;  %vm700_vm2 = vcmp.eq.s32.totalorder %v1789_v34, %v1879_v23 }
  0xa1   : > { %vm707_vm11 = vcmp.eq.s32.totalorder %v1789_v34, %v1895_v31 }
  0xa3   : > { %v1881_v24 = vpop.permute.xlu1 %660 }
  0xa4   : > { %vm701_vm3 = vcmp.eq.s32.totalorder %v1789_v34, %v1881_v24 }
  0xa7   : > { %v1883_v25 = vpop.permute.xlu1 %663 }
  0xa8   : > { %vm702_vm4 = vcmp.eq.s32.totalorder %v1789_v34, %v1883_v25 }
  0xab   : > { %v1885_v26 = vpop.permute.xlu1 %666 }
  0xac   : > { %vm703_vm5 = vcmp.eq.s32.totalorder %v1789_v34, %v1885_v26 }
  0xaf   : > { %v1887_v27 = vpop.permute.xlu1 %669 }
  0xb0   : > { %vm704_vm6 = vcmp.eq.s32.totalorder %v1789_v34, %v1887_v27 }
  0xb3   : > { %v1889_v28 = vpop.permute.xlu1 %672 }
  0xb4   : > { %vm705_vm7 = vcmp.eq.s32.totalorder %v1789_v34, %v1889_v28 }
  0xb7   : > { %v1893_v30 = vpop.permute.xlu1 %675 }
  0xb8   : > { %vm706_vm9 = vcmp.eq.s32.totalorder %v1789_v34, %v1893_v30 }
  0xbb   : > { %v1897_v32 = vpop.permute.xlu1 %681 }
  0xbc   : > { %vm708_vm10 = vcmp.eq.s32.totalorder %v1789_v34, %v1897_v32 }
 0x10e   : > { %v1384_v36 = vpop.f32.mrb[0].mxu0 }
 0x10f   : > { %v1795_v37 = vadd.f32 %v1384_v36, %v1316_v35  ;;  %v536_v38 = vpop.f32.mrb[1].mxu0  ;;  %v1901_v36 = vpop.permute.xlu1 %687 }
 0x110   : > { %v1797_v39 = vadd.f32 %v1316_v35, %v536_v38  ;;  %v1385_v40 = vpop.f32.mrb[2].mxu0  ;;  %vm710_vm13 = vcmp.eq.s32.totalorder %v1789_v34, %v1901_v36 }
 0x111   : > { %v1799_v41 = vadd.f32 %v1385_v40, %v1316_v35  ;;  %v539_v42 = vpop.f32.mrb[3].mxu0  ;;  %v604_v43 = vsel %vm601_vm0, %v1795_v37, 0.0 }
 0x112   : > { %v1804_v44 = vadd.f32 %v1316_v35, %v539_v42  ;;  %622 = vadd.xlane.f32.xlu1 %v604_v43  ;;  %v602_v45 = vsel %vm601_vm0, %v1797_v39, 0.0 }
 0x113   : > { %618 = vadd.xlane.f32.xlu0 %v602_v45  ;;  %v605_v46 = vsel %vm601_vm0, %v1799_v41, 0.0 }
 0x114   : > { %v603_v48 = vsel %vm601_vm0, %v1804_v44, 0.0 }
 0x116   : > { %v1388_v47 = vpop.f32.mrb[4].mxu0  ;;  %624 = vadd.xlane.f32.xlu1 %v605_v46 }
 0x117   : > { %v1815_v49 = vadd.f32 %v1388_v47, %v1316_v35  ;;  %v552_v50 = vpop.f32.mrb[5].mxu0  ;;  %620 = vadd.xlane.f32.xlu0 %v603_v48 }
 0x118   : > { %v1389_v51 = vpop.f32.mrb[6].mxu0  ;;  %v1822_v55 = vadd.f32 %v1316_v35, %v552_v50 }
 0x119   : > { %v1817_v52 = vadd.f32 %v1389_v51, %v1316_v35  ;;  %v555_v53 = vpop.f32.mrb[7].mxu0  ;;  %v608_v54 = vsel %vm601_vm0, %v1815_v49, 0.0 }
 0x11a   : > { %v1824_v56 = vadd.f32 %v1316_v35, %v555_v53  ;;  %v606_v59 = vsel %vm601_vm0, %v1822_v55, 0.0 }
 0x11b   : > { %630 = vadd.xlane.f32.xlu0 %v608_v54  ;;  %v609_v57 = vsel %vm601_vm0, %v1817_v52, 0.0 }
 0x11c   : > { %632 = vadd.xlane.f32.xlu1 %v609_v57  ;;  %v607_v62 = vsel %vm601_vm0, %v1824_v56, 0.0 }
 0x11e   : > { %v1392_v58 = vpop.f32.mrb[8].mxu0 }
 0x11f   : > { %v1832_v60 = vadd.f32 %v1392_v58, %v1316_v35  ;;  %v568_v61 = vpop.f32.mrb[9].mxu0  ;;  %626 = vadd.xlane.f32.xlu0 %v606_v59 }
 0x120   : > { %v1393_v63 = vpop.f32.mrb[10].mxu0  ;;  %628 = vadd.xlane.f32.xlu1 %v607_v62  ;;  %v1842_v3 = vadd.f32 %v1316_v35, %v568_v61 }
 0x121   : > { %2340 = vst [vmem:[#allocation7_spill] sm:$0xff] %v1832_v60  ;;  %v1837_v0 = vadd.f32 %v1393_v63, %v1316_v35  ;;  %v571_v1 = vpop.f32.mrb[11].mxu0  ;;  %v612_v2 = vsel %vm601_vm0, %v1832_v60, 0.0 }
 0x122   : > { %2342 = vst [vmem:[#allocation9_spill] sm:$0xff] %v1842_v3  ;;  %v1844_v4 = vadd.f32 %v1316_v35, %v571_v1  ;;  %v610_v7 = vsel %vm601_vm0, %v1842_v3, 0.0 }
 0x123   : > { %2341 = vst [vmem:[#allocation8_spill] sm:$0xff] %v1837_v0  ;;  %638 = vadd.xlane.f32.xlu0 %v612_v2  ;;  %v613_v5 = vsel %vm601_vm0, %v1837_v0, 0.0 }
 0x124   : > { %2343 = vst [vmem:[#allocation10_spill] sm:$0xff] %v1844_v4  ;;  %640 = vadd.xlane.f32.xlu1 %v613_v5  ;;  %v611_v10 = vsel %vm601_vm0, %v1844_v4, 0.0 }
 0x126   : > { %v1396_v6 = vpop.f32.mrb[12].mxu0 }
 0x127   : > { %v1852_v8 = vadd.f32 %v1396_v6, %v1316_v35  ;;  %v584_v9 = vpop.f32.mrb[13].mxu0  ;;  %634 = vadd.xlane.f32.xlu0 %v610_v7 }
 0x128   : > { %v1397_v11 = vpop.f32.mrb[14].mxu0  ;;  %636 = vadd.xlane.f32.xlu1 %v611_v10  ;;  %v1862_v15 = vadd.f32 %v1316_v35, %v584_v9 }
 0x129   : > { %2344 = vst [vmem:[#allocation11_spill] sm:$0xff] %v1852_v8  ;;  %v1857_v12 = vadd.f32 %v1397_v11, %v1316_v35  ;;  %v587_v13 = vpop.f32.mrb[15].mxu0  ;;  %v616_v14 = vsel %vm601_vm0, %v1852_v8, 0.0 }
 0x12a   : > { %2346 = vst [vmem:[#allocation13_spill] sm:$0xff] %v1862_v15  ;;  %v1864_v16 = vadd.f32 %v1316_v35, %v587_v13  ;;  %v614_v18 = vsel %vm601_vm0, %v1862_v15, 0.0  ;;  %v1899_v35 = vpop.permute.xlu0 %684 }
 0x12b   : > { %2345 = vst [vmem:[#allocation12_spill] sm:$0xff] %v1857_v12  ;;  %646 = vadd.xlane.f32.xlu0 %v616_v14  ;;  %v617_v17 = vsel %vm601_vm0, %v1857_v12, 0.0  ;;  %vm709_vm12 = vcmp.eq.s32.totalorder %v1789_v34, %v1899_v35 }
 0x12c   : > { %2347 = vst [vmem:[#allocation14_spill] sm:$0xff] %v1864_v16  ;;  %648 = vadd.xlane.f32.xlu1 %v617_v17  ;;  %v615_v19 = vsel %vm601_vm0, %v1864_v16, 0.0 }
 0x12e   : > { %v1903_v38 = vpop.permute.xlu0 %690 }
 0x12f   : > { %642 = vadd.xlane.f32.xlu0 %v614_v18  ;;  %vm711_vm14 = vcmp.eq.s32.totalorder %v1789_v34, %v1903_v38  ;;  %v352_v38 = vld [vmem:[%s1739_s19 + $0x8] sm:$0xff] }
 0x130   : > { %644 = vadd.xlane.f32.xlu1 %v615_v19 }
 0x141   : > { %693 = vperm.xlu1 %1440, %v348_v20  }
 0x145   : > { %696 = vperm.xlu0 %1439, %v349_v21  }
 0x19f   : > { %v1905_v40 = vpop.xlane.xlu1 %622 }
 0x1a0   : > { %v1907_v42 = vpop.xlane.xlu0 %618  ;;  %v726_v61 = vsel %vm700_vm2, %v1905_v40, -1e+30 }
 0x1a1   : > { %v724_v5 = vsel %vm698_vm8, %v1907_v42, -1e+30 }
 0x1a3   : > { %v1911_v45 = vpop.xlane.xlu1 %624 }
 0x1a4   : > { %v1909_v43 = vpop.xlane.xlu0 %620  ;;  %v727_v6 = vsel %vm701_vm3, %v1911_v45, -1e+30 }
 0x1a5   : > { %v725_v7 = vsel %vm699_vm1, %v1909_v43, -1e+30 }
 0x1a8   : > { %v1913_v46 = vpop.xlane.xlu0 %630 }
 0x1a9   : > { %v1915_v47 = vpop.xlane.xlu1 %632  ;;  %v730_v63 = vsel %vm704_vm6, %v1913_v46, -1e+30 }
 0x1aa   : > { %v731_v10 = vsel %vm705_vm7, %v1915_v47, -1e+30  ;;  %v742_v14 = vmax.f32 %v726_v61, %v730_v63 }
 0x1ab   : > { %v743_v63 = vmax.f32 %v727_v6, %v731_v10 }
 0x1ac   : > { %v1917_v48 = vpop.xlane.xlu0 %626 }
 0x1ad   : > { %v1919_v50 = vpop.xlane.xlu1 %628  ;;  %v728_v1 = vsel %vm702_vm4, %v1917_v48, -1e+30 }
 0x1ae   : > { %v729_v2 = vsel %vm703_vm5, %v1919_v50, -1e+30  ;;  %v740_v17 = vmax.f32 %v724_v5, %v728_v1 }
 0x1af   : > { %v741_v18 = vmax.f32 %v725_v7, %v729_v2 }
 0x1b0   : > { %v1921_v51 = vpop.xlane.xlu0 %638 }
 0x1b1   : > { %v1923_v53 = vpop.xlane.xlu1 %640  ;;  %v734_v19 = vsel %vm708_vm10, %v1921_v51, -1e+30 }
 0x1b2   : > { %v735_v21 = vsel %vm709_vm12, %v1923_v53, -1e+30  ;;  %v746_v5 = vmax.f32 %v742_v14, %v734_v19  ;;  %v2348_v19 = vlaneseq }
 0x1b3   : > { %v747_v8 = vmax.f32 %v743_v63, %v735_v21 }
 0x1b4   : > { %v1925_v54 = vpop.xlane.xlu0 %634  ;;  %v2034_v4 = vshrl.u32 %v2348_v19, 7 }
 0x1b5   : > { %v1927_v57 = vpop.xlane.xlu1 %636  ;;  %v732_v11 = vsel %vm706_vm9, %v1925_v54, -1e+30 }
 0x1b6   : > { %v733_v13 = vsel %vm707_vm11, %v1927_v57, -1e+30  ;;  %v744_v1 = vmax.f32 %v740_v17, %v732_v11  ;;  %v771_v63 = vsub.s32 0, %v2034_v4 }
 0x1b7   : > { %v745_v2 = vmax.f32 %v741_v18, %v733_v13 }
 0x1b8   : > { %v1929_v58 = vpop.xlane.xlu0 %646 }
 0x1b9   : > { %v1931_v59 = vpop.xlane.xlu1 %648 }
 0x1bc   : > { %v1989_v9 = vpop.xlane.xlu0 %642 }
 0x1bd   : > { %v1959_v62 = vpop.xlane.xlu1 %644  ;;  %v736_v33 = vsel %vm710_vm13, %v1989_v9, -1e+30 }
 0x1be   : > { %v737_v61 = vsel %vm711_vm14, %v1959_v62, -1e+30  ;;  %v748_v16 = vmax.f32 %v744_v1, %v736_v33 }
 0x1bf   : > { %v749_v15 = vmax.f32 %v745_v2, %v737_v61  ;;  %v761_v61 = vld [vmem:[#allocation2] sm:$0x1] }
 0x1c1   : > { %v2009_v20 = vpop.permute.xlu1 %693  ;;  %v752_v10 = vmax.f32 %v748_v16, %v749_v15 }
 0x1c2   : > { %vm712_vm15 = vcmp.eq.s32.totalorder %v1789_v34, %v2009_v20  ;;  %v353_v20 = vld [vmem:[%s1739_s19 + $0x10] sm:$0xff] }
 0x1c3   : > { %v738_v7 = vsel %vm712_vm15, %v1929_v58, -1e+30 }
 0x1c4   : > { %v697_v12 = vpop.permute.xlu0 %696  ;;  %v750_v60 = vmax.f32 %v746_v5, %v738_v7 }
 0x1c5   : > { %vm713_vm0 = vcmp.eq.s32.totalorder %v1789_v34, %v697_v12  ;;  %v354_v12 = vld [vmem:[%s1739_s19 + $0x18] sm:$0xff] }
 0x1c6   : > { %v739_v0 = vsel %vm713_vm0, %v1931_v59, -1e+30 }
 0x1c7   : > { %v751_v6 = vmax.f32 %v747_v8, %v739_v0 }
 0x1c9   : > { %v753_v11 = vmax.f32 %v750_v60, %v751_v6  ;;  %v351_v6 = vld [vmem:[%s1739_s19] sm:$0xff] }
 0x1cb   : > { %v754_v13 = vmax.f32 %v752_v10, %v753_v11 }
 0x1cd   : > { %v755_v14 = vrot.slane %v754_v13, 4 }
 0x1cf   : > { %v756_v17 = vmax.f32 %v754_v13, %v755_v14  ;;  %v355_v13 = vld [vmem:[%s1739_s19 + $0x20] sm:$0xff]  ;;  %v2094_v14 = vstv %s2088_s13 }
 0x1d1   : > { %v757_v18 = vrot.slane %v756_v17, 2 }
 0x1d3   : > { %v758_v21 = vmax.f32 %v756_v17, %v757_v18  ;;  %v356_v18 = vld [vmem:[%s1739_s19 + $0x28] sm:$0xff] }
 0x1d5   : > { %v759_v33 = vrot.slane %v758_v21, 1 }
 0x1d7   : > { %v760_v1 = vmax.f32 %v758_v21, %v759_v33  ;;  %v357_v21 = vld [vmem:[%s1739_s19 + $0x30] sm:$0xff] }
 0x1d9   : > { %v762_v2 = vmax.f32 %v761_v61, %v760_v1 }
 0x1db   : > { %763 = vst [vmem:[#allocation2] sm:$0x1] %v762_v2  ;;  %v784_v3 = vrot.slane %v762_v2, %v771_v63  ;;  %v764_v5 = vsub.f32 %v761_v61, %v762_v2  ;;  %v358_v2 = vld [vmem:[%s1739_s19 + $0x38] sm:$0xff] }
 0x1dd   : > { %v787_v60 = vsel %vm699_vm1, %v784_v3, 0.0  ;;  %v786_v0 = vsel %vm698_vm8, %v784_v3, 0.0  ;;  %v788_v8 = vsel %vm700_vm2, %v784_v3, 0.0  ;;  %v789_v15 = vsel %vm701_vm3, %v784_v3, 0.0 }
 0x1de   : > { %804 = vadd.xlane.f32.xlu0 %v787_v60  ;;  %802 = vadd.xlane.f32.xlu1 %v786_v0  ;;  %v790_v16 = vsel %vm702_vm4, %v784_v3, 0.0  ;;  %v791_v22 = vsel %vm703_vm5, %v784_v3, 0.0  ;;  %v792_v23 = vsel %vm704_vm6, %v784_v3, 0.0  ;;  %v793_v24 = vsel %vm705_vm7, %v784_v3, 0.0 }
 0x1df   : > { %v794_v25 = vsel %vm706_vm9, %v784_v3, 0.0  ;;  %v795_v26 = vsel %vm707_vm11, %v784_v3, 0.0  ;;  %v796_v27 = vsel %vm708_vm10, %v784_v3, 0.0  ;;  %v797_v28 = vsel %vm709_vm12, %v784_v3, 0.0 }
 0x1e0   : > { %v798_v29 = vsel %vm710_vm13, %v784_v3, 0.0  ;;  %v799_v30 = vsel %vm711_vm14, %v784_v3, 0.0  ;;  %v800_v31 = vsel %vm712_vm15, %v784_v3, 0.0  ;;  %v801_v32 = vsel %vm713_vm0, %v784_v3, 0.0 }
 0x1e1   : > { %v765_v35 = vmul.f32 1.442695, %v764_v5  ;;  %vm1661_vm2 = vmmov 0   ;;  %vm767_vm3 = vcmp.eq.s32.totalorder %v2034_v4, %v1789_v34 }
 0x1e2   : > { %806 = vadd.xlane.f32.xlu0 %v788_v8  ;;  %808 = vadd.xlane.f32.xlu1 %v789_v15  ;;  %v359_v8 = vld [vmem:[%s1739_s19 + $0x40] sm:$0xff] }
 0x1e3   : > { %1457 = vpow2.f32 %v765_v35 }
 0x1e4   : > { %1459 = vlog2.f32 %v352_v38  ;;  %v362_v38 = vld [vmem:[%s1739_s19 + $0x58] sm:$0xff] }
 0x1e5   : > { %1461 = vlog2.f32 %v351_v6 }
 0x1e6   : > { %810 = vadd.xlane.f32.xlu0 %v790_v16  ;;  %812 = vadd.xlane.f32.xlu1 %v791_v22  ;;  %1463 = vlog2.f32 %v353_v20 }
 0x1e7   : > { %1465 = vlog2.f32 %v354_v12 }
 0x1e8   : > { %1467 = vlog2.f32 %v355_v13 }
 0x1e9   : > { %1469 = vlog2.f32 %v356_v18 }
 0x1ea   : > { %814 = vadd.xlane.f32.xlu0 %v792_v23  ;;  %816 = vadd.xlane.f32.xlu1 %v793_v24  ;;  %1471 = vlog2.f32 %v357_v21  ;;  %v360_v23 = vld [vmem:[%s1739_s19 + $0x48] sm:$0xff] }
 0x1eb   : > { %1473 = vlog2.f32 %v358_v2 }
 0x1ed   : > { %v1458_v36 = vpop.eup %1457 }
 0x1ee   : > { %818 = vadd.xlane.f32.xlu0 %v794_v25  ;;  %820 = vadd.xlane.f32.xlu1 %v795_v26  ;;  %v2084_v7 = vrot.slane %v1458_v36, %v771_v63  ;;  %v1460_v3 = vpop.eup %1459 }
 0x1ef   : > { %v1462_v10 = vpop.eup %1461  ;;  %v837_v11 = vmul.f32 0.6931472, %v1460_v3 }
 0x1f0   : > { %v835_v17 = vmul.f32 0.6931472, %v1462_v10  ;;  %v1464_v61 = vpop.eup %1463 }
 0x1f1   : > { %v868_v19 = vmul.f32 %v2094_v14, %v837_v11  ;;  %v1466_v63 = vpop.eup %1465  ;;  %v839_v60 = vmul.f32 0.6931472, %v1464_v61  ;;  %v363_v11 = vld [vmem:[%s1739_s19 + $0x60] sm:$0xff] }
 0x1f2   : > { %822 = vadd.xlane.f32.xlu0 %v796_v27  ;;  %824 = vadd.xlane.f32.xlu1 %v797_v28  ;;  %v867_v33 = vmul.f32 %v2094_v14, %v835_v17  ;;  %v841_v0 = vmul.f32 0.6931472, %v1466_v63  ;;  %v1468_v15 = vpop.eup %1467  ;;  %v365_v63 = vld [vmem:[%s1739_s19 + $0x70] sm:$0xff] }
 0x1f3   : > { %v885_v1 = vmul.f32 1.442695, %v868_v19  ;;  %v869_v16 = vmul.f32 %v2094_v14, %v839_v60  ;;  %v1470_v22 = vpop.eup %1469  ;;  %v843_v25 = vmul.f32 0.6931472, %v1468_v15  ;;  %v364_v19 = vld [vmem:[%s1739_s19 + $0x68] sm:$0xff] }
 0x1f4   : > { %v883_v5 = vmul.f32 1.442695, %v867_v33  ;;  %v870_v24 = vmul.f32 %v2094_v14, %v841_v0  ;;  %v1472_v26 = vpop.eup %1471  ;;  %v845_v28 = vmul.f32 0.6931472, %v1470_v22 }
 0x1f5   : > { %1475 = vpow2.f32 %v885_v1  ;;  %v887_v27 = vmul.f32 1.442695, %v869_v16  ;;  %v1474_v35 = vpop.eup %1473 }
 0x1f6   : > { %826 = vadd.xlane.f32.xlu0 %v798_v29  ;;  %828 = vadd.xlane.f32.xlu1 %v799_v30  ;;  %1477 = vpow2.f32 %v883_v5  ;;  %v889_v29 = vmul.f32 1.442695, %v870_v24  ;;  %v361_v30 = vld [vmem:[%s1739_s19 + $0x50] sm:$0xff]  ;;  %v872_v36 = vmul.f32 %v2094_v14, %v845_v28  ;;  %v849_v10 = vmul.f32 0.6931472, %v1474_v35  ;;  %v366_v5 = vld [vmem:[%s1739_s19 + $0x78] sm:$0xff] }
 0x1f7   : > { %1479 = vlog2.f32 %v359_v8 }
 0x1f8   : > { %1481 = vlog2.f32 %v360_v23  ;;  %v893_v17 = vmul.f32 1.442695, %v872_v36  ;;  %v874_v33 = vmul.f32 %v2094_v14, %v849_v10 }
 0x1f9   : > { %1483 = vpow2.f32 %v887_v27 }
 0x1fa   : > { %830 = vadd.xlane.f32.xlu0 %v800_v31  ;;  %832 = vadd.xlane.f32.xlu1 %v801_v32  ;;  %v871_v31 = vmul.f32 %v2094_v14, %v843_v25  ;;  %v847_v32 = vmul.f32 0.6931472, %v1472_v26  ;;  %1485 = vlog2.f32 %v361_v30  ;;  %v897_v0 = vmul.f32 1.442695, %v874_v33 }
 0x1fb   : > { %1487 = vpow2.f32 %v889_v29 }
 0x1fc   : > { %v891_v12 = vmul.f32 1.442695, %v871_v31  ;;  %v873_v3 = vmul.f32 %v2094_v14, %v847_v32  ;;  %1489 = vlog2.f32 %v362_v38 }
 0x1fe   : > { %v895_v21 = vmul.f32 1.442695, %v873_v3 }
 0x1ff   : > { %v2109_v6 = vpop.eup %1475 }
 0x200   : > { %v2111_v20 = vpop.eup %1477  ;;  %1491 = vrcp.f32 %v2109_v6 }
 0x201   : > { %v1480_v13 = vpop.eup %1479  ;;  %1493 = vrcp.f32 %v2111_v20 }
 0x202   : > { %v1482_v18 = vpop.eup %1481  ;;  %1495 = vlog2.f32 %v363_v11  ;;  %v851_v61 = vmul.f32 0.6931472, %v1480_v13 }
 0x203   : > { %1497 = vpow2.f32 %v891_v12  ;;  %v853_v1 = vmul.f32 0.6931472, %v1482_v18  ;;  %v2120_v2 = vpop.eup %1483 }
 0x204   : > { %1499 = vpow2.f32 %v893_v17  ;;  %v1486_v60 = vpop.eup %1485  ;;  %v875_v8 = vmul.f32 %v2094_v14, %v851_v61 }
 0x205   : > { %1501 = vlog2.f32 %v364_v19  ;;  %v2124_v15 = vpop.eup %1487  ;;  %v876_v22 = vmul.f32 %v2094_v14, %v853_v1  ;;  %v855_v29 = vmul.f32 0.6931472, %v1486_v60 }
 0x206   : > { %1503 = vlog2.f32 %v365_v63  ;;  %v1490_v16 = vpop.eup %1489  ;;  %v899_v25 = vmul.f32 1.442695, %v875_v8 }
 0x207   : > { %1505 = vpow2.f32 %v895_v21  ;;  %v901_v28 = vmul.f32 1.442695, %v876_v22  ;;  %v857_v31 = vmul.f32 0.6931472, %v1490_v16  ;;  %v877_v12 = vmul.f32 %v2094_v14, %v855_v29 }
 0x208   : > { %1507 = vlog2.f32 %v366_v5 }
 0x209   : > { %1509 = vpow2.f32 %v897_v0  ;;  %v878_v10 = vmul.f32 %v2094_v14, %v857_v31  ;;  %v903_v33 = vmul.f32 1.442695, %v877_v12 }
 0x20a   : > { %v1492_v23 = vpop.eup %1491  ;;  %1511 = vrcp.f32 %v2120_v2 }
 0x20b   : > { %v1494_v24 = vpop.eup %1493  ;;  %1513 = vpow2.f32 %v899_v25  ;;  %v949_v3 = vadd.f32 1e-10, %v1492_v23  ;;  %v905_v63 = vmul.f32 1.442695, %v878_v10 }
 0x20c   : > { %v1496_v26 = vpop.eup %1495  ;;  %1515 = vrcp.f32 %v2124_v15  ;;  %v948_v17 = vadd.f32 1e-10, %v1494_v24 }
 0x20d   : > { %v2128_v27 = vpop.eup %1497  ;;  %v859_v35 = vmul.f32 0.6931472, %v1496_v26  ;;  %1517 = vpow2.f32 %v901_v28 }
 0x20e   : > { %v2130_v30 = vpop.eup %1499  ;;  %1519 = vrcp.f32 %v2128_v27 }
 0x20f   : > { %v1502_v32 = vpop.eup %1501  ;;  %1521 = vrcp.f32 %v2130_v30  ;;  %v879_v18 = vmul.f32 %v2094_v14, %v859_v35 }
 0x210   : > { %v1504_v36 = vpop.eup %1503  ;;  %v861_v11 = vmul.f32 0.6931472, %v1502_v32 }
 0x211   : > { %v2133_v38 = vpop.eup %1505  ;;  %v863_v19 = vmul.f32 0.6931472, %v1504_v36  ;;  %v907_v60 = vmul.f32 1.442695, %v879_v18 }
 0x212   : > { %v1508_v13 = vpop.eup %1507  ;;  %1523 = vrcp.f32 %v2133_v38  ;;  %v880_v1 = vmul.f32 %v2094_v14, %v861_v11 }
 0x213   : > { %v2141_v21 = vpop.eup %1509  ;;  %1525 = vrcp.f32 %v949_v3  ;;  %v865_v5 = vmul.f32 0.6931472, %v1508_v13  ;;  %v881_v0 = vmul.f32 %v2094_v14, %v863_v19 }
 0x214   : > { %v1512_v61 = vpop.eup %1511  ;;  %1527 = vrcp.f32 %v948_v17  ;;  %v909_v23 = vmul.f32 1.442695, %v880_v1 }
 0x215   : > { %1529 = vrcp.f32 %v2141_v21  ;;  %v2146_v8 = vpop.eup %1513  ;;  %v950_v16 = vadd.f32 1e-10, %v1512_v61  ;;  %v882_v24 = vmul.f32 %v2094_v14, %v865_v5  ;;  %v911_v26 = vmul.f32 1.442695, %v881_v0 }
 0x216   : > { %1531 = vpow2.f32 %v903_v33  ;;  %v1516_v22 = vpop.eup %1515 }
 0x217   : > { %1533 = vpow2.f32 %v905_v63  ;;  %v2149_v25 = vpop.eup %1517  ;;  %v951_v31 = vadd.f32 1e-10, %v1516_v22  ;;  %v913_v35 = vmul.f32 1.442695, %v882_v24 }
 0x218   : > { %1535 = vpow2.f32 %v907_v60  ;;  %v1520_v28 = vpop.eup %1519 }
 0x219   : > { %1537 = vrcp.f32 %v2146_v8  ;;  %v1522_v29 = vpop.eup %1521  ;;  %v952_v36 = vadd.f32 1e-10, %v1520_v28 }
 0x21a   : > { %1539 = vrcp.f32 %v950_v16  ;;  %v953_v3 = vadd.f32 1e-10, %v1522_v29 }
 0x21b   : > { %1541 = vpow2.f32 %v909_v23 }
 0x21c   : > { %v1524_v32 = vpop.eup %1523  ;;  %1543 = vpow2.f32 %v911_v26 }
 0x21d   : > { %v2152_v12 = vpop.eup %1525  ;;  %1545 = vrcp.f32 %v2149_v25  ;;  %v954_v10 = vadd.f32 1e-10, %v1524_v32  ;;  %v997_v32 = vstv %s996_s16 }
 0x21e   : > { %v2155_v14 = vpop.eup %1527  ;;  %1547 = vrcp.f32 %v951_v31  ;;  %vm2191_vm1 = vcmp.eq.s32.totalorder %v997_v32, 1 }
 0x21f   : > { %v1530_v11 = vpop.eup %1529  ;;  %1549 = vpow2.f32 %v913_v35 }
 0x220   : > { %v2157_v13 = vpop.eup %1531  ;;  %1551 = vrcp.f32 %v952_v36 }
 0x221   : > { %v2160_v17 = vpop.eup %1533  ;;  %1553 = vrcp.f32 %v953_v3 }
 0x222   : > { %v2162_v33 = vpop.eup %1535  ;;  %1555 = vrcp.f32 %v954_v10  ;;  %v955_v10 = vadd.f32 1e-10, %v1530_v11 }
 0x223   : > { %v1538_v1 = vpop.eup %1537  ;;  %1557 = vrcp.f32 %v2157_v13 }
 0x224   : > { %v2167_v5 = vpop.eup %1539  ;;  %1559 = vrcp.f32 %v2160_v17 }
 0x225   : > { %v2172_v16 = vpop.eup %1541  ;;  %1561 = vrcp.f32 %v2162_v33 }
 0x26b   : > { %v805_v18 = vpop.xlane.xlu0 %804  ;;  %v803_v19 = vpop.xlane.xlu1 %802 }
 0x26c   : > { %v1016_v61 = vsub.f32 %v1909_v43, %v805_v18  ;;  %v1015_v63 = vsub.f32 %v1907_v42, %v803_v19  ;;  %v2175_v43 = vpop.eup %1543 }
 0x26d   : > { %v1546_v26 = vpop.eup %1545 }
 0x26e   : > { %v1033_v60 = vmul.f32 1.442695, %v1016_v61  ;;  %v1031_v0 = vmul.f32 1.442695, %v1015_v63  ;;  %v2179_v28 = vpop.eup %1547 }
 0x26f   : > { %v807_v22 = vpop.xlane.xlu0 %806  ;;  %v809_v23 = vpop.xlane.xlu1 %808 }
 0x270   : > { %1563 = vpow2.f32 %v1033_v60  ;;  %v1017_v42 = vsub.f32 %v1905_v40, %v807_v22  ;;  %v1018_v24 = vsub.f32 %v1911_v45, %v809_v23  ;;  %v2182_v35 = vpop.eup %1549 }
 0x271   : > { %1565 = vpow2.f32 %v1031_v0  ;;  %v2185_v18 = vpop.eup %1551  ;;  %v956_v0 = vadd.f32 1e-10, %v1538_v1  ;;  %v999_v1 = vsel %vm2191_vm1, %v2111_v20, %v2155_v14 }
 0x272   : > { %v1035_v29 = vmul.f32 1.442695, %v1017_v42  ;;  %v1037_v31 = vmul.f32 1.442695, %v1018_v24  ;;  %1567 = vrcp.f32 %v2172_v16  ;;  %v2189_v19 = vpop.eup %1553 }
 0x273   : > { %v811_v36 = vpop.xlane.xlu0 %810  ;;  %v813_v3 = vpop.xlane.xlu1 %812  ;;  %1569 = vrcp.f32 %v2175_v43 }
 0x274   : > { %1571 = vpow2.f32 %v1035_v29  ;;  %v1019_v40 = vsub.f32 %v1917_v48, %v811_v36  ;;  %v1020_v45 = vsub.f32 %v1919_v50, %v813_v3  ;;  %v2195_v63 = vpop.eup %1555  ;;  %v957_v48 = vadd.f32 1e-10, %v1546_v26 }
 0x275   : > { %1573 = vpow2.f32 %v1037_v31  ;;  %v1558_v22 = vpop.eup %1557  ;;  %v1000_v31 = vsel %vm2191_vm1, %v2109_v6, %v2152_v12  ;;  %v1001_v6 = vsel %vm2191_vm1, %v2120_v2, %v2167_v5 }
 0x276   : > { %v1039_v60 = vmul.f32 1.442695, %v1019_v40  ;;  %v1041_v11 = vmul.f32 1.442695, %v1020_v45  ;;  %1575 = vrcp.f32 %v2182_v35  ;;  %v1560_v50 = vpop.eup %1559 }
 0x277   : > { %v815_v23 = vpop.xlane.xlu0 %814  ;;  %v817_v42 = vpop.xlane.xlu1 %816  ;;  %1577 = vrcp.f32 %v955_v10  ;;  %v958_v10 = vadd.f32 1e-10, %v1558_v22  ;;  %v959_v12 = vadd.f32 1e-10, %v1560_v50  ;;  %v1002_v22 = vsel %vm2191_vm1, %v2124_v15, %v2179_v28 }
 0x278   : > { %1579 = vpow2.f32 %v1039_v60  ;;  %v1021_v24 = vsub.f32 %v1913_v46, %v815_v23  ;;  %v1022_v29 = vsub.f32 %v1915_v47, %v817_v42  ;;  %v1562_v32 = vpop.eup %1561 }
 0x279   : > { %1581 = vpow2.f32 %v1041_v11  ;;  %v960_v23 = vadd.f32 1e-10, %v1562_v32 }
 0x27a   : > { %v1564_v36 = vpop.eup %1563  ;;  %v1043_v26 = vmul.f32 1.442695, %v1021_v24  ;;  %v1045_v3 = vmul.f32 1.442695, %v1022_v29  ;;  %1583 = vrcp.f32 %v956_v0 }
 0x27b   : > { %v1566_v46 = vpop.eup %1565  ;;  %v819_v40 = vpop.xlane.xlu0 %818  ;;  %v1064_v45 = vmul.f32 %v1564_v36, %v1000_v31  ;;  %1585 = vrcp.f32 %v957_v48  ;;  %v1660_v31 = vmov 0.0  }
 0x27c   : > { %v821_v47 = vpop.xlane.xlu1 %820  ;;  %v1568_v60 = vpop.eup %1567  ;;  %1587 = vpow2.f32 %v1043_v26  ;;  %v1023_v20 = vsub.f32 %v1925_v54, %v819_v40  ;;  %v1063_v11 = vmul.f32 %v1566_v46, %v999_v1  ;;  %1398 = vmatprep.subr.bf16.mxu1 %v1660_v31  ;;  %1414 = vmatprep.mubr.msk.bf16.mxu1 %vm1661_vm2, %v1660_v31 }
 0x27d   : > { %v1024_v14 = vsub.f32 %v1927_v57, %v821_v47  ;;  %v1570_v0 = vpop.eup %1569  ;;  %1589 = vpow2.f32 %v1045_v3  ;;  %1086 = vperm.xlu1 %1440, %v1064_v45   ;;  %v1003_v57 = vsel %vm2191_vm1, %v2128_v27, %v2185_v18  ;;  %v961_v29 = vadd.f32 1e-10, %v1568_v60 }
 0x27e   : > { %v1572_v42 = vpop.eup %1571  ;;  %v1047_v2 = vmul.f32 1.442695, %v1023_v20  ;;  %1081 = vperm.xlu0 %1439, %v1063_v11   ;;  %1591 = vrcp.f32 %v958_v10  ;;  %v1004_v27 = vsel %vm2191_vm1, %v2130_v30, %v2189_v19  ;;  %v962_v10 = vadd.f32 1e-10, %v1570_v0 }
 0x27f   : > { %v1049_v5 = vmul.f32 1.442695, %v1024_v14  ;;  %v1574_v48 = vpop.eup %1573  ;;  %v823_v50 = vpop.xlane.xlu0 %822  ;;  %v1065_v24 = vmul.f32 %v1572_v42, %v1001_v6  ;;  %1593 = vrcp.f32 %v959_v12 }
 0x280   : > { %v825_v54 = vpop.xlane.xlu1 %824  ;;  %v1576_v15 = vpop.eup %1575  ;;  %1595 = vpow2.f32 %v1047_v2  ;;  %v1025_v28 = vsub.f32 %v1921_v51, %v823_v50  ;;  %v1066_v1 = vmul.f32 %v1574_v48, %v1002_v22 }
 0x281   : > { %v1026_v32 = vsub.f32 %v1923_v53, %v825_v54  ;;  %v1578_v36 = vpop.eup %1577  ;;  %1597 = vpow2.f32 %v1049_v5  ;;  %1091 = vperm.xlu1 %1440, %v1065_v24   ;;  %v1005_v53 = vsel %vm2191_vm1, %v2133_v38, %v2195_v63  ;;  %v963_v45 = vadd.f32 1e-10, %v1576_v15 }
 0x282   : > { %v1580_v18 = vpop.eup %1579  ;;  %v1051_v26 = vmul.f32 1.442695, %v1025_v28  ;;  %1096 = vperm.xlu0 %1439, %v1066_v1   ;;  %1599 = vrcp.f32 %v960_v23  ;;  %v1006_v20 = vsel %vm2191_vm1, %v2141_v21, %v1578_v36 }
 0x283   : > { %v1053_v3 = vmul.f32 1.442695, %v1026_v32  ;;  %v1582_v46 = vpop.eup %1581  ;;  %v827_v40 = vpop.xlane.xlu0 %826  ;;  %v1067_v47 = vmul.f32 %v1580_v18, %v1003_v57  ;;  %1601 = vrcp.f32 %v961_v29 }
 0x284   : > { %v829_v51 = vpop.xlane.xlu1 %828  ;;  %v1584_v6 = vpop.eup %1583  ;;  %1603 = vpow2.f32 %v1051_v26  ;;  %v1027_v30 = vsub.f32 %v1989_v9, %v827_v40  ;;  %v1068_v12 = vmul.f32 %v1582_v46, %v1004_v27 }
 0x285   : > { %v1028_v19 = vsub.f32 %v1959_v62, %v829_v51  ;;  %v1586_v60 = vpop.eup %1585  ;;  %1605 = vpow2.f32 %v1053_v3  ;;  %1101 = vperm.xlu1 %1440, %v1067_v47   ;;  %v1007_v62 = vsel %vm2191_vm1, %v2146_v8, %v1584_v6 }
 0x286   : > { %v1588_v14 = vpop.eup %1587  ;;  %v1055_v11 = vmul.f32 1.442695, %v1027_v30  ;;  %1106 = vperm.xlu0 %1439, %v1068_v12   ;;  %1607 = vrcp.f32 %v962_v10  ;;  %v1008_v48 = vsel %vm2191_vm1, %v2149_v25, %v1586_v60 }
 0x287   : > { %v1057_v0 = vmul.f32 1.442695, %v1028_v19  ;;  %v1590_v38 = vpop.eup %1589  ;;  %v831_v63 = vpop.xlane.xlu0 %830  ;;  %v1069_v23 = vmul.f32 %v1588_v14, %v1005_v53  ;;  %1609 = vrcp.f32 %v963_v45 }
 0x288   : > { %v833_v22 = vpop.xlane.xlu1 %832  ;;  %v1592_v9 = vpop.eup %1591  ;;  %1611 = vpow2.f32 %v1055_v11  ;;  %v1029_v42 = vsub.f32 %v1929_v58, %v831_v63  ;;  %v1070_v2 = vmul.f32 %v1590_v38, %v1006_v20 }
 0x289   : > { %v1030_v21 = vsub.f32 %v1931_v59, %v833_v22  ;;  %v1594_v5 = vpop.eup %1593  ;;  %1613 = vpow2.f32 %v1057_v0  ;;  %1111 = vperm.xlu1 %1440, %v1069_v23   ;;  %v1009_v58 = vsel %vm2191_vm1, %v2157_v13, %v1592_v9  ;;  %v2351_v23 = vld [vmem:[#allocation9_spill] sm:$0xff]  ;;  %v2352_v9 = vld [vmem:[#allocation10_spill] sm:$0xff] }
 0x28a   : > { %v1596_v50 = vpop.eup %1595  ;;  %v1059_v54 = vmul.f32 1.442695, %v1029_v42  ;;  %1116 = vperm.xlu0 %1439, %v1070_v2   ;;  %v1010_v25 = vsel %vm2191_vm1, %v2160_v17, %v1594_v5 }
 0x28b   : > { %v1061_v24 = vmul.f32 1.442695, %v1030_v21  ;;  %v1598_v8 = vpop.eup %1597  ;;  %v1071_v57 = vmul.f32 %v1596_v50, %v1007_v62 }
 0x28c   : > { %v1600_v29 = vpop.eup %1599  ;;  %1615 = vpow2.f32 %v1059_v54  ;;  %v1072_v15 = vmul.f32 %v1598_v8, %v1008_v48 }
 0x28d   : > { %v1602_v59 = vpop.eup %1601  ;;  %1617 = vpow2.f32 %v1061_v24  ;;  %1121 = vperm.xlu1 %1440, %v1071_v57   ;;  %v1011_v18 = vsel %vm2191_vm1, %v2162_v33, %v1600_v29  ;;  %v2355_v24 = vld [vmem:[#allocation13_spill] sm:$0xff]  ;;  %v2356_v29 = vld [vmem:[#allocation14_spill] sm:$0xff] }
 0x28e   : > { %v1604_v28 = vpop.eup %1603  ;;  %1126 = vperm.xlu0 %1439, %v1072_v15   ;;  %v1012_v13 = vsel %vm2191_vm1, %v2172_v16, %v1602_v59  ;;  %v774_v16 = vsel %vm767_vm3, %v2084_v7, 0.0 }
 0x28f   : > { %v1606_v32 = vpop.eup %1605  ;;  %v1073_v1 = vmul.f32 %v1604_v28, %v1009_v58  ;;  %v2357_v28 = vld [vmem:[#allocation11_spill] sm:$0xff] }
 0x290   : > { %v1608_v36 = vpop.eup %1607  ;;  %v1074_v27 = vmul.f32 %v1606_v32, %v1010_v25  ;;  %v1333_v25 = vld [vmem:[%s319_s8] ss:$0 sm:$0xff]  ;;  %s1233_s8 = sshll.u32 %s1663_s28, 4  ;;  %s1234_s8 = int_to_ptr.vmem [resolvable:$true] %s1233_s8 }
 0x291   : > { %v1610_v26 = vpop.eup %1609  ;;  %1131 = vperm.xlu1 %1440, %v1073_v1   ;;  %v1013_v40 = vsel %vm2191_vm1, %v2175_v43, %v1608_v36  ;;  %v2358_v36 = vld [vmem:[#allocation12_spill] sm:$0xff]  ;;  %vm720_vm4 = vcmp.eq.s32.totalorder %v2034_v4, %v1333_v25  ;;  %s1619_s22 = scalar_lea.vmem %s1234_s8, 128  ;;  %p1626_p11 = scmp.lt.s32.totalorder %s1234_s8, %s1234_s8 }
 0x292   : > { %v1612_v3 = vpop.eup %1611  ;;  %1136 = vperm.xlu0 %1439, %v1074_v27   ;;  %v1014_v33 = vsel %vm2191_vm1, %v2182_v35, %v1610_v26  ;;  %vm1335_vm5 = vmpackc.low %vm720_vm4, %vm720_vm4  ;;  %v1662_v26 = vmov 1.0|1.0   ;;  %p1620_p8 = scmp.ne.s32.totalorder %s1234_s8, %s1619_s22  ;;  %p1627_p12 = scmp.lt.s32.totalorder %s1619_s22, %s1619_s22 }
 0x293   : > { %v1614_v10 = vpop.eup %1613  ;;  %v1075_v17 = vmul.f32 %v1612_v3, %v1011_v18 }
 0x294   : > { %v1076_v46 = vmul.f32 %v1614_v10, %v1012_v13  ;;  %v777_v13 = vld [vmem:[#allocation4] sm:$0xff]  ;;  %p1621_p9 = pnand %p1620_p8, %p1422_p7  ;;  %p1628_p13 = por %p1627_p12, %p1626_p11 }
 0x295   : > { %1141 = vperm.xlu1 %1440, %v1075_v17  }
 0x296   : > { %v1616_v51 = vpop.eup %1615  ;;  %1146 = vperm.xlu0 %1439, %v1076_v46   ;;  %p1622_p10 = pneg %p1621_p9 }
 0x297   : > { %v1618_v47 = vpop.eup %1617  ;;  %v1077_v53 = vmul.f32 %v1616_v51, %v1013_v40 }
 0x298   : > { %v1078_v45 = vmul.f32 %v1618_v47, %v1014_v33  ;;  %p1629_p0 = pnand %p1628_p13, %p1622_p10 }
 0x299   : > { %1151 = vperm.xlu1 %1440, %v1077_v53  }
 0x29a   : > { %1156 = vperm.xlu0 %1439, %v1078_v45  }
 0x2bd   : > { %775 = vadd.xlane.f32.xlu1 %v774_v16 }
 0x2fc   : > { %v1087_v43 = vpop.permute.xlu1 %1086 }
 0x2fd   : > { %v1160_v61 = vmul.f32 %v1087_v43, %v1804_v44  ;;  %v1082_v35 = vpop.permute.xlu0 %1081 }
 0x2fe   : > { %v1159_v6 = vmul.f32 %v1082_v35, %v1797_v39 }
 0x300   : > { %v1092_v30 = vpop.permute.xlu1 %1091  ;;  %v1175_v19 = vpack.c.bf16 %v1160_v61, %v1159_v6 }
 0x301   : > { %v1161_v12 = vmul.f32 %v1092_v30, %v1795_v37  ;;  %v1097_v60 = vpop.permute.xlu0 %1096 }
 0x302   : > { %v1162_v20 = vmul.f32 %v1097_v60, %v1799_v41  ;;  %1399 = vmatpush3.bf16.msra.mxu1 %v1175_v19 }
 0x303   : > { %1400 = vmatprep.subr.bf16.mxu1 %v1660_v31 }
 0x304   : > { %v1176_v34 = vpack.c.bf16 %v1162_v20, %v1161_v12  ;;  %v1102_v14 = vpop.permute.xlu1 %1101 }
 0x305   : > { %v1163_v7 = vmul.f32 %v1102_v14, %v1822_v55  ;;  %v1107_v11 = vpop.permute.xlu0 %1106 }
 0x306   : > { %v1164_v44 = vmul.f32 %v1107_v11, %v1824_v56  ;;  %1401 = vmatpush3.bf16.msra.mxu1 %v1176_v34 }
 0x307   : > { %1402 = vmatprep.subr.bf16.mxu1 %v1660_v31 }
 0x308   : > { %v1177_v39 = vpack.c.bf16 %v1164_v44, %v1163_v7  ;;  %v1112_v0 = vpop.permute.xlu1 %1111 }
 0x309   : > { %v1165_v37 = vmul.f32 %v1112_v0, %v1815_v49  ;;  %v1117_v38 = vpop.permute.xlu0 %1116  ;;  %v2353_v49 = vld [vmem:[#allocation7_spill] sm:$0xff] }
 0x30a   : > { %v1166_v41 = vmul.f32 %v1117_v38, %v1817_v52  ;;  %1403 = vmatpush3.bf16.msra.mxu1 %v1177_v39  ;;  %v2354_v52 = vld [vmem:[#allocation8_spill] sm:$0xff] }
 0x30b   : > { %1404 = vmatprep.subr.bf16.mxu1 %v1660_v31 }
 0x30c   : > { %v1178_v63 = vpack.c.bf16 %v1166_v41, %v1165_v37  ;;  %v1122_v22 = vpop.permute.xlu1 %1121 }
 0x30d   : > { %v1167_v55 = vmul.f32 %v1122_v22, %v2351_v23  ;;  %v1127_v62 = vpop.permute.xlu0 %1126 }
 0x30e   : > { %v1168_v56 = vmul.f32 %v1127_v62, %v2352_v9  ;;  %1405 = vmatpush3.bf16.msra.mxu1 %v1178_v63 }
 0x30f   : > { %1406 = vmatprep.subr.bf16.mxu1 %v1660_v31 }
 0x310   : > { %v1179_v42 = vpack.c.bf16 %v1168_v56, %v1167_v55  ;;  %v1132_v21 = vpop.permute.xlu1 %1131 }
 0x311   : > { %v1169_v2 = vmul.f32 %v1132_v21, %v2353_v49  ;;  %v1137_v5 = vpop.permute.xlu0 %1136 }
 0x312   : > { %v1170_v48 = vmul.f32 %v1137_v5, %v2354_v52  ;;  %1407 = vmatpush3.bf16.msra.mxu1 %v1179_v42 }
 0x313   : > { %1408 = vmatprep.subr.bf16.mxu1 %v1660_v31 }
 0x314   : > { %v1180_v50 = vpack.c.bf16 %v1170_v48, %v1169_v2  ;;  %v1142_v54 = vpop.permute.xlu1 %1141 }
 0x315   : > { %v1171_v8 = vmul.f32 %v1142_v54, %v2355_v24  ;;  %v1147_v57 = vpop.permute.xlu0 %1146 }
 0x316   : > { %v1172_v15 = vmul.f32 %v1147_v57, %v2356_v29  ;;  %1409 = vmatpush3.bf16.msra.mxu1 %v1180_v50 }
 0x317   : > { %1410 = vmatprep.subr.bf16.mxu1 %v1660_v31 }
 0x318   : > { %v1181_v58 = vpack.c.bf16 %v1172_v15, %v1171_v8  ;;  %v1152_v59 = vpop.permute.xlu1 %1151 }
 0x319   : > { %v1173_v32 = vmul.f32 %v1152_v59, %v2357_v28  ;;  %v1157_v1 = vpop.permute.xlu0 %1156 }
 0x31a   : > { %v1174_v27 = vmul.f32 %v1157_v1, %v2358_v36  ;;  %1411 = vmatpush3.bf16.msra.mxu1 %v1181_v58 }
 0x31b   : > { %1412 = vmatprep.subr.bf16.mxu1 %v1660_v31 }
 0x31c   : > { %v1182_v18 = vpack.c.bf16 %v1174_v27, %v1173_v32 }
 0x31e   : > { %1413 = vmatpush3.bf16.msra.mxu1 %v1182_v18 }
 0x321   : > { %1415 = vmatmul.mubr.msk.bf16.vlgmr.msra.gmra.mrb[0].mxu1 %vm1335_vm5, %v1662_v26 }
 0x34a   : > { %v776_v3 = vpop.xlane.xlu1 %775 }
 0x34b   : > { %v778_v10 = vmul.f32 %v777_v13, %v776_v3 }
 0x3f4   : > { %v1218_v17 = vpop.f32.mrb[0].mxu1 }
 0x3f5   : > { %v1224_v46 = vadd.f32 %v1218_v17, %v778_v10  ;;  %v1416_v40 = vpop.f32.mrb[1].mxu1 }
 0x3f6   : > { %v1221_v33 = vpop.f32.mrb[2].mxu1 }
 0x3f7   : > { %1225 = vst [vmem:[#allocation4] sm:$0xff] %v1224_v46  ;;  %v1417_v31 = vpop.f32.mrb[3].mxu1 }
 0x3f8   : > { %1632 = shalt.err (!%p1629_p0)
}
 0x3f9   : > { %s1633_s25 = scalar_lea.hbm %s2330_s7, 128 }
 0x3fa   : > { %p1634_p1 = scmp.ne.s32.totalorder %s2330_s7, %s1633_s25  ;;  %p1639_p4 = scmp.lt.u32.totalorder %s1633_s25, %s2330_s7 }
 0x3fc   : > { %p1635_p2 = pnand %p1634_p1, %p1422_p7 }
 0x3fe   : > { %p1636_p3 = pneg %p1635_p2 }
 0x400   : > { %p1641_p5 = pnand %p1639_p4, %p1636_p3 }
 0x402   : > { %1644 = shalt.err (!%p1641_p5)
}
 0x403   : > { %1419 = dma.vmem_to_hbm [thread:$0]  (%p1422_p7), %s1234_s8, 128, %s2330_s7, [#allocation5]  }
 0x404   : > { %1650 = dma.done.wait (%p1422_p7), [#allocation5], 128  }
 0x405   : > { %1652 = vsyncadd (%p1422_p7), [#allocation5], 4294967168 }
 0x406 PF: > { %s19_s26 = sadd.s32 1, %s1655_s26  }
 0x407   : > { %p16_p6 = scmp.ge.s32.totalorder %s19_s26, 5  }
 0x409   :  { %18 = sbr.rel (!%p16_p6) target bundleno = 3 (0x3), region = 88 }
 0x410   :  { %1246 = vsyncpa [#allocation5], 1 }
 0x411   :  { %1248 = vsyncpa [#allocation5 + $0x1], 1 }

</bundles_post_ra>
